<compile_context>
chip_gen: v7x
topology: tpu7x:2x2x1
jax: 0.10.0
libtpu: 0.0.40
codegen_flags: <defaults>
</compile_context>

<pallas_src>
import functools

import jax
import jax.numpy as jnp
from jax.experimental import pallas as pl
from jax.experimental.pallas import tpu as pltpu

LN_EPS = 1e-12  # BertConfig.layer_norm_eps default


def _round_up(x, m):
    return (x + m - 1) // m * m


def _pick_tile_b(b):
    if b >= 256:
        return 256            # fills the 256-row MXU on v6e/v7x
    if b >= 128:
        return 128            # fine for v5e's 128x128 MXUs
    return _round_up(max(b, 1), 16)   # >=16 rows for bf16 sublane packing


def _pick_vmem_limit_bytes():
    try:
        kind = jax.devices()[0].device_kind.lower()
    except Exception:
        kind = ""
    if "7" in kind:                      # v7x: 64 MiB physical VMEM per TC
        return 48 * 1024 * 1024
    return 96 * 1024 * 1024              # v5e / v6e: 128 MiB physical VMEM


# ----------------------------------------------------------------------------
# Fused kernel: 2x LayerNorm + single fused encoder matmul + per-example CE
# ----------------------------------------------------------------------------
def fused_encoder_ce_kernel(e1_ref, e2_ref, lab_ref,
                            g1_ref, bt1_ref, g2_ref, bt2_ref,
                            wf_ref, bf_ref, out_ref, *, hidden_dim, tile_b):
    hp = e1_ref.shape[1]                          # lane-padded hidden
    col = jax.lax.broadcasted_iota(jnp.int32, (tile_b, hp), 1)
    col_valid = col < hidden_dim
    inv_h = 1.0 / hidden_dim

    def layernorm(x_raw, g, b):
        # bf16 tile in, f32 statistics over real hidden columns (padding is
        # zero; padded gamma/beta are zero so padded output columns stay 0).
        x = x_raw.astype(jnp.float32)
        mu = jnp.sum(x, axis=-1, keepdims=True) * inv_h
        d = x - mu
        var = jnp.sum(jnp.where(col_valid, d * d, 0.0), axis=-1,
                      keepdims=True) * inv_h
        return d * jax.lax.rsqrt(var + LN_EPS) * g + b

    h = (layernorm(e1_ref[...], g1_ref[...], bt1_ref[...])
         + layernorm(e2_ref[...], g2_ref[...], bt2_ref[...]))

    # Encoder: the 6 activation-free Linear layers were pre-composed into one
    # affine map; bf16 MXU inputs, f32 accumulation, f32 bias.
    logits = jnp.dot(h.astype(jnp.bfloat16), wf_ref[...],
                     preferred_element_type=jnp.float32) + bf_ref[...]

    # Cross-entropy over the real (unpadded) classes; per-example loss out.
    masked = jnp.where(col_valid, logits, -1e30)
    m = jnp.max(masked, axis=-1, keepdims=True)
    lse = jnp.log(jnp.sum(jnp.exp(masked - m), axis=-1, keepdims=True)) + m
    picked = jnp.sum(jnp.where(col == lab_ref[...], logits, 0.0),
                     axis=-1, keepdims=True)
    out_ref[...] = lse - picked


def run_fused(e1, e2, labels, ln_g1, ln_b1, ln_g2, ln_b2, w_fused, b_fused,
              *, hidden_dim, tile_b):
    b_pad, hp = e1.shape
    num_tiles = b_pad // tile_b

    kernel = functools.partial(fused_encoder_ce_kernel,
                               hidden_dim=hidden_dim, tile_b=tile_b)

    def row_spec(shape):                  # per-tile blocks
        return pl.BlockSpec(shape, lambda i: (i, 0))

    def const_spec(shape):                # VMEM-resident across grid steps
        return pl.BlockSpec(shape, lambda i: (0, 0))

    in_specs = [
        row_spec((tile_b, hp)),           # e1 (bf16)
        row_spec((tile_b, hp)),           # e2 (bf16)
        row_spec((tile_b, 1)),            # labels (int32)
        const_spec((1, hp)), const_spec((1, hp)),    # LN1 gamma / beta
        const_spec((1, hp)), const_spec((1, hp)),    # LN2 gamma / beta
        const_spec((hp, hp)),             # fused encoder weight (bf16)
        const_spec((1, hp)),              # fused encoder bias (f32)
    ]

    flops = 2 * b_pad * hp * hp + 16 * b_pad * hp
    bytes_accessed = ((e1.size + e2.size) * 2 + labels.size * 4
                      + w_fused.size * 2 + b_fused.size * 4
                      + 4 * hp * 4 + b_pad * 4)

    per_example = pl.pallas_call(
        kernel,
        out_shape=jax.ShapeDtypeStruct((b_pad, 1), jnp.float32),
        grid=(num_tiles,),
        in_specs=in_specs,
        out_specs=pl.BlockSpec((tile_b, 1), lambda i: (i, 0)),
        compiler_params=pltpu.CompilerParams(
            dimension_semantics=("parallel",),     # tiles independent -> v7x 2-TC
            vmem_limit_bytes=_pick_vmem_limit_bytes()),
        cost_estimate=pl.CostEstimate(
            flops=flops,
            transcendentals=b_pad * (hp + 4),
            bytes_accessed=bytes_accessed),
    )(e1, e2, labels, ln_g1, ln_b1, ln_g2, ln_b2, w_fused, b_fused)
    return per_example


# ----------------------------------------------------------------------------
# Parameters (deterministic synthetic init mirroring the module's shapes).
# The 6 encoder Linear layers are composed in f32 into one fused affine map,
# padded lane-dense and cast to bf16 (bias stays f32).
# ----------------------------------------------------------------------------
def _fuse_linear_chain(layers):
    w, b = layers[0]
    for wk, bk in layers[1:]:
        b = b @ wk + bk
        w = w @ wk
    return w, b


def init_params(key, hidden_dim, seq_len, vocab_size=25, type_vocab=2):
    hp = _round_up(hidden_dim, 128)
    keys = jax.random.split(key, 32)
    ki = iter(range(32))
    p = {}
    # Two independent BertEmbeddings (is_share_param=False)
    for j in (1, 2):
        p[f"word_emb_{j}"] = 0.02 * jax.random.normal(
            keys[next(ki)], (vocab_size, hidden_dim), jnp.float32)
        p[f"pos_emb_{j}"] = 0.02 * jax.random.normal(
            keys[next(ki)], (seq_len, hidden_dim), jnp.float32)
        p[f"tok_emb_{j}"] = 0.02 * jax.random.normal(
            keys[next(ki)], (type_vocab, hidden_dim), jnp.float32)
        # LN params zero-padded beyond hidden_dim -> padded cols stay exactly 0
        p[f"ln_g{j}"] = jnp.zeros((1, hp), jnp.float32).at[:, :hidden_dim].set(1.0)
        p[f"ln_b{j}"] = jnp.zeros((1, hp), jnp.float32)

    # Encoder: linear1 = [H->4H, 4H->H, H->H], linear3 = [H->H x3]; there is
    # no activation anywhere between them, so the chain composes exactly.
    dims = [(hidden_dim, 4 * hidden_dim),
            (4 * hidden_dim, hidden_dim)] + [(hidden_dim, hidden_dim)] * 4
    layers = []
    for din, dout in dims:
        w = jax.random.normal(keys[next(ki)], (din, dout),
                              jnp.float32) / jnp.sqrt(float(din))
        b = 0.01 * jax.random.normal(keys[next(ki)], (1, dout), jnp.float32)
        layers.append((w, b))
    w_f, b_f = _fuse_linear_chain(layers)                 # f32 composition
    p["w_fused"] = jnp.pad(
        w_f, ((0, hp - hidden_dim), (0, hp - hidden_dim))).astype(jnp.bfloat16)
    p["b_fused"] = jnp.pad(b_f, ((0, 0), (0, hp - hidden_dim)))   # f32
    return p


# ----------------------------------------------------------------------------
# Forward pass matching SimpleModel.forward(x, y)
# ----------------------------------------------------------------------------
@jax.jit
def simple_model_forward(params, x, y):
    b = x.shape[0]
    hidden = params["word_emb_1"].shape[1]    # real hidden size / num classes
    hp = params["w_fused"].shape[0]           # lane-padded hidden

    # Loss reads only h3[:, 0]; LayerNorm and all Linears are row-wise, so
    # only the CLS token of each sequence needs to be computed (exact).
    cls_tok = x[:, 0]                                            # [B]

    def bert_embed_cls(j):
        # word + position(0) + token_type(=0) embeddings; LayerNorm in-kernel.
        we = params[f"word_emb_{j}"][cls_tok]                    # [B, H]
        pe = params[f"pos_emb_{j}"][0][None, :]                  # [1, H]
        te = params[f"tok_emb_{j}"][0][None, :]                  # [1, H]
        return we + pe + te
    # TODO(synk): BertEmbeddings dropout omitted (eval-mode / deterministic forward).

    tile_b = _pick_tile_b(b)
    b_pad = _round_up(b, tile_b)

    def pad_cast(e):   # pad rows + lanes, ship bf16 (halves per-step HBM bytes)
        return jnp.pad(e, ((0, b_pad - b), (0, hp - hidden))).astype(jnp.bfloat16)

    e1 = pad_cast(bert_embed_cls(1))
    e2 = pad_cast(bert_embed_cls(2))
    labels = jnp.pad(y.astype(jnp.int32), (0, b_pad - b)).reshape(-1, 1)

    per_example = run_fused(e1, e2, labels,
                            params["ln_g1"], params["ln_b1"],
                            params["ln_g2"], params["ln_b2"],
                            params["w_fused"], params["b_fused"],
                            hidden_dim=hidden, tile_b=tile_b)
    # Mean cross-entropy over the real (unpadded) examples.
    return jnp.sum(per_example[:b, 0]) * (1.0 / b)


if __name__ == "__main__":
    hidden_dim = 32
    seq_len = 8
    batch = 2

    key = jax.random.PRNGKey(0)
    k_params, k_x, k_y = jax.random.split(key, 3)

    params = init_params(k_params, hidden_dim, seq_len)
    x = jax.random.randint(k_x, (batch, seq_len), 0, 25, dtype=jnp.int32)
    y = jax.random.randint(k_y, (batch,), 0, hidden_dim, dtype=jnp.int32)

    loss = simple_model_forward(params, x, y)
    jax.block_until_ready(loss)
    assert loss.shape == () and bool(jnp.isfinite(loss))
    print("KERNEL_OK")
</pallas_src>

<mosaic_0001>
module attributes {stable_mosaic.version = 11 : i64} {
  func.func @fused_encoder_ce_kernel(%arg0: i32, %arg1: memref<16x128xbf16, #tpu.memory_space<vmem>>, %arg2: memref<16x128xbf16, #tpu.memory_space<vmem>>, %arg3: memref<16x1xi32, #tpu.memory_space<vmem>>, %arg4: memref<1x128xf32, #tpu.memory_space<vmem>>, %arg5: memref<1x128xf32, #tpu.memory_space<vmem>>, %arg6: memref<1x128xf32, #tpu.memory_space<vmem>>, %arg7: memref<1x128xf32, #tpu.memory_space<vmem>>, %arg8: memref<128x128xbf16, #tpu.memory_space<vmem>>, %arg9: memref<1x128xf32, #tpu.memory_space<vmem>>, %arg10: memref<16x1xf32, #tpu.memory_space<vmem>>) attributes {dimension_semantics = [#tpu.dimension_semantics<parallel>], iteration_bounds = array<i64: 1>, scalar_prefetch = 0 : i64, scratch_operands = 0 : i64, tpu.core_type = #tpu.core_type<tc>, window_params = [{transform_indices = @transform_0, window_bounds = array<i64: 16, 128>}, {transform_indices = @transform_1, window_bounds = array<i64: 16, 128>}, {transform_indices = @transform_2, window_bounds = array<i64: 16, 1>}, {pipeline_mode = #tpu.pipeline_mode<synchronous>, transform_indices = @transform_3, window_bounds = array<i64: 1, 128>}, {pipeline_mode = #tpu.pipeline_mode<synchronous>, transform_indices = @transform_4, window_bounds = array<i64: 1, 128>}, {pipeline_mode = #tpu.pipeline_mode<synchronous>, transform_indices = @transform_5, window_bounds = array<i64: 1, 128>}, {pipeline_mode = #tpu.pipeline_mode<synchronous>, transform_indices = @transform_6, window_bounds = array<i64: 1, 128>}, {pipeline_mode = #tpu.pipeline_mode<synchronous>, transform_indices = @transform_7, window_bounds = array<i64: 128, 128>}, {pipeline_mode = #tpu.pipeline_mode<synchronous>, transform_indices = @transform_8, window_bounds = array<i64: 1, 128>}, {transform_indices = @transform_9, window_bounds = array<i64: 16, 1>}]} {
    %0 = tpu.iota {dimensions = array<i32: 1>} : vector<16x128xi32>
    %c32_i32 = arith.constant 32 : i32
    %1 = vector.broadcast %c32_i32 : i32 to vector<16x128xi32>
    %2 = arith.cmpi slt, %0, %1 : vector<16x128xi32>
    %c0 = arith.constant 0 : index
    %c0_0 = arith.constant 0 : index
    %3 = vector.load %arg1[%c0, %c0_0] : memref<16x128xbf16, #tpu.memory_space<vmem>>, vector<16x128xbf16>
    %c0_1 = arith.constant 0 : index
    %c0_2 = arith.constant 0 : index
    %4 = vector.load %arg4[%c0_1, %c0_2] : memref<1x128xf32, #tpu.memory_space<vmem>>, vector<1x128xf32>
    %c0_3 = arith.constant 0 : index
    %c0_4 = arith.constant 0 : index
    %5 = vector.load %arg5[%c0_3, %c0_4] : memref<1x128xf32, #tpu.memory_space<vmem>>, vector<1x128xf32>
    %6 = arith.extf %3 : vector<16x128xbf16> to vector<16x128xf32>
    %cst = arith.constant dense<0.000000e+00> : vector<16xf32>
    %7 = vector.multi_reduction <add>, %6, %cst [1] : vector<16x128xf32> to vector<16xf32>
    %8 = vector.shape_cast %7 : vector<16xf32> to vector<16x1xf32>
    %cst_5 = arith.constant 3.125000e-02 : f32
    %9 = vector.broadcast %cst_5 : f32 to vector<16x1xf32>
    %10 = arith.mulf %8, %9 : vector<16x1xf32>
    %11 = vector.broadcast %10 : vector<16x1xf32> to vector<16x128xf32>
    %12 = arith.subf %6, %11 : vector<16x128xf32>
    %13 = arith.mulf %12, %12 : vector<16x128xf32>
    %cst_6 = arith.constant 0.000000e+00 : f32
    %14 = vector.broadcast %cst_6 : f32 to vector<16x128xf32>
    %15 = arith.select %2, %13, %14 : vector<16x128xi1>, vector<16x128xf32>
    %cst_7 = arith.constant dense<0.000000e+00> : vector<16xf32>
    %16 = vector.multi_reduction <add>, %15, %cst_7 [1] : vector<16x128xf32> to vector<16xf32>
    %17 = vector.shape_cast %16 : vector<16xf32> to vector<16x1xf32>
    %cst_8 = arith.constant 3.125000e-02 : f32
    %18 = vector.broadcast %cst_8 : f32 to vector<16x1xf32>
    %19 = arith.mulf %17, %18 : vector<16x1xf32>
    %cst_9 = arith.constant 9.99999996E-13 : f32
    %20 = vector.broadcast %cst_9 : f32 to vector<16x1xf32>
    %21 = arith.addf %19, %20 : vector<16x1xf32>
    %22 = math.rsqrt %21 : vector<16x1xf32>
    %23 = vector.broadcast %22 : vector<16x1xf32> to vector<16x128xf32>
    %24 = arith.mulf %12, %23 : vector<16x128xf32>
    %25 = vector.broadcast %4 : vector<1x128xf32> to vector<16x128xf32>
    %26 = arith.mulf %24, %25 : vector<16x128xf32>
    %27 = vector.broadcast %5 : vector<1x128xf32> to vector<16x128xf32>
    %28 = arith.addf %26, %27 : vector<16x128xf32>
    %c0_10 = arith.constant 0 : index
    %c0_11 = arith.constant 0 : index
    %29 = vector.load %arg2[%c0_10, %c0_11] : memref<16x128xbf16, #tpu.memory_space<vmem>>, vector<16x128xbf16>
    %c0_12 = arith.constant 0 : index
    %c0_13 = arith.constant 0 : index
    %30 = vector.load %arg6[%c0_12, %c0_13] : memref<1x128xf32, #tpu.memory_space<vmem>>, vector<1x128xf32>
    %c0_14 = arith.constant 0 : index
    %c0_15 = arith.constant 0 : index
    %31 = vector.load %arg7[%c0_14, %c0_15] : memref<1x128xf32, #tpu.memory_space<vmem>>, vector<1x128xf32>
    %32 = arith.extf %29 : vector<16x128xbf16> to vector<16x128xf32>
    %cst_16 = arith.constant dense<0.000000e+00> : vector<16xf32>
    %33 = vector.multi_reduction <add>, %32, %cst_16 [1] : vector<16x128xf32> to vector<16xf32>
    %34 = vector.shape_cast %33 : vector<16xf32> to vector<16x1xf32>
    %cst_17 = arith.constant 3.125000e-02 : f32
    %35 = vector.broadcast %cst_17 : f32 to vector<16x1xf32>
    %36 = arith.mulf %34, %35 : vector<16x1xf32>
    %37 = vector.broadcast %36 : vector<16x1xf32> to vector<16x128xf32>
    %38 = arith.subf %32, %37 : vector<16x128xf32>
    %39 = arith.mulf %38, %38 : vector<16x128xf32>
    %cst_18 = arith.constant 0.000000e+00 : f32
    %40 = vector.broadcast %cst_18 : f32 to vector<16x128xf32>
    %41 = arith.select %2, %39, %40 : vector<16x128xi1>, vector<16x128xf32>
    %cst_19 = arith.constant dense<0.000000e+00> : vector<16xf32>
    %42 = vector.multi_reduction <add>, %41, %cst_19 [1] : vector<16x128xf32> to vector<16xf32>
    %43 = vector.shape_cast %42 : vector<16xf32> to vector<16x1xf32>
    %cst_20 = arith.constant 3.125000e-02 : f32
    %44 = vector.broadcast %cst_20 : f32 to vector<16x1xf32>
    %45 = arith.mulf %43, %44 : vector<16x1xf32>
    %cst_21 = arith.constant 9.99999996E-13 : f32
    %46 = vector.broadcast %cst_21 : f32 to vector<16x1xf32>
    %47 = arith.addf %45, %46 : vector<16x1xf32>
    %48 = math.rsqrt %47 : vector<16x1xf32>
    %49 = vector.broadcast %48 : vector<16x1xf32> to vector<16x128xf32>
    %50 = arith.mulf %38, %49 : vector<16x128xf32>
    %51 = vector.broadcast %30 : vector<1x128xf32> to vector<16x128xf32>
    %52 = arith.mulf %50, %51 : vector<16x128xf32>
    %53 = vector.broadcast %31 : vector<1x128xf32> to vector<16x128xf32>
    %54 = arith.addf %52, %53 : vector<16x128xf32>
    %55 = arith.addf %28, %54 : vector<16x128xf32>
    %56 = arith.truncf %55 : vector<16x128xf32> to vector<16x128xbf16>
    %c0_22 = arith.constant 0 : index
    %c0_23 = arith.constant 0 : index
    %57 = vector.load %arg8[%c0_22, %c0_23] : memref<128x128xbf16, #tpu.memory_space<vmem>>, vector<128x128xbf16>
    %cst_24 = arith.constant dense<0.000000e+00> : vector<16x128xf32>
    %58 = tpu.matmul %56, %57, %cst_24 {dimension_numbers = #tpu.dot_dimension_numbers<[1], [0], [0], [1], [0, 0, 1, 1], [], []>} : vector<16x128xbf16>, vector<128x128xbf16>, vector<16x128xf32> -> vector<16x128xf32>
    %c0_25 = arith.constant 0 : index
    %c0_26 = arith.constant 0 : index
    %59 = vector.load %arg9[%c0_25, %c0_26] : memref<1x128xf32, #tpu.memory_space<vmem>>, vector<1x128xf32>
    %60 = vector.broadcast %59 : vector<1x128xf32> to vector<16x128xf32>
    %61 = arith.addf %58, %60 : vector<16x128xf32>
    %cst_27 = arith.constant -1.000000e+30 : f32
    %62 = vector.broadcast %cst_27 : f32 to vector<16x128xf32>
    %63 = arith.select %2, %61, %62 : vector<16x128xi1>, vector<16x128xf32>
    %cst_28 = arith.constant dense<0xFF800000> : vector<16xf32>
    %64 = vector.multi_reduction <maximumf>, %63, %cst_28 [1] : vector<16x128xf32> to vector<16xf32>
    %65 = vector.shape_cast %64 : vector<16xf32> to vector<16x1xf32>
    %66 = vector.broadcast %65 : vector<16x1xf32> to vector<16x128xf32>
    %67 = arith.subf %63, %66 : vector<16x128xf32>
    %68 = math.exp %67 : vector<16x128xf32>
    %cst_29 = arith.constant dense<0.000000e+00> : vector<16xf32>
    %69 = vector.multi_reduction <add>, %68, %cst_29 [1] : vector<16x128xf32> to vector<16xf32>
    %70 = vector.shape_cast %69 : vector<16xf32> to vector<16x1xf32>
    %71 = math.log %70 : vector<16x1xf32>
    %72 = arith.addf %71, %65 : vector<16x1xf32>
    %c0_30 = arith.constant 0 : index
    %c0_31 = arith.constant 0 : index
    %73 = vector.load %arg3[%c0_30, %c0_31] : memref<16x1xi32, #tpu.memory_space<vmem>>, vector<16x1xi32>
    %74 = vector.broadcast %73 : vector<16x1xi32> to vector<16x128xi32>
    %75 = arith.cmpi eq, %0, %74 : vector<16x128xi32>
    %cst_32 = arith.constant 0.000000e+00 : f32
    %76 = vector.broadcast %cst_32 : f32 to vector<16x128xf32>
    %77 = arith.select %75, %61, %76 : vector<16x128xi1>, vector<16x128xf32>
    %cst_33 = arith.constant dense<0.000000e+00> : vector<16xf32>
    %78 = vector.multi_reduction <add>, %77, %cst_33 [1] : vector<16x128xf32> to vector<16xf32>
    %79 = vector.shape_cast %78 : vector<16xf32> to vector<16x1xf32>
    %80 = arith.subf %72, %79 : vector<16x1xf32>
    %c0_34 = arith.constant 0 : index
    %c0_35 = arith.constant 0 : index
    %81 = vector.load %arg10[%c0_34, %c0_35] : memref<16x1xf32, #tpu.memory_space<vmem>>, vector<16x1xf32>
    tpu.vector_store %arg10[%c0_34, %c0_35], %80 {strides = array<i32>} : memref<16x1xf32, #tpu.memory_space<vmem>>, vector<16x1xf32>,
    return
  }
  func.func @transform_0(%arg0: i32) -> (i32, i32) {
    %c0_i32 = arith.constant 0 : i32
    %c0_i32_0 = arith.constant 0 : i32
    return %arg0, %c0_i32 : i32, i32
  }
  func.func @transform_1(%arg0: i32) -> (i32, i32) {
    %c0_i32 = arith.constant 0 : i32
    %c0_i32_0 = arith.constant 0 : i32
    return %arg0, %c0_i32 : i32, i32
  }
  func.func @transform_2(%arg0: i32) -> (i32, i32) {
    %c0_i32 = arith.constant 0 : i32
    %c0_i32_0 = arith.constant 0 : i32
    return %arg0, %c0_i32 : i32, i32
  }
  func.func @transform_3(%arg0: i32) -> (i32, i32) {
    %c0_i32 = arith.constant 0 : i32
    %c0_i32_0 = arith.constant 0 : i32
    %c0_i32_1 = arith.constant 0 : i32
    return %c0_i32, %c0_i32_0 : i32, i32
  }
  func.func @transform_4(%arg0: i32) -> (i32, i32) {
    %c0_i32 = arith.constant 0 : i32
    %c0_i32_0 = arith.constant 0 : i32
    %c0_i32_1 = arith.constant 0 : i32
    return %c0_i32, %c0_i32_0 : i32, i32
  }
  func.func @transform_5(%arg0: i32) -> (i32, i32) {
    %c0_i32 = arith.constant 0 : i32
    %c0_i32_0 = arith.constant 0 : i32
    %c0_i32_1 = arith.constant 0 : i32
    return %c0_i32, %c0_i32_0 : i32, i32
  }
  func.func @transform_6(%arg0: i32) -> (i32, i32) {
    %c0_i32 = arith.constant 0 : i32
    %c0_i32_0 = arith.constant 0 : i32
    %c0_i32_1 = arith.constant 0 : i32
    return %c0_i32, %c0_i32_0 : i32, i32
  }
  func.func @transform_7(%arg0: i32) -> (i32, i32) {
    %c0_i32 = arith.constant 0 : i32
    %c0_i32_0 = arith.constant 0 : i32
    %c0_i32_1 = arith.constant 0 : i32
    return %c0_i32, %c0_i32_0 : i32, i32
  }
  func.func @transform_8(%arg0: i32) -> (i32, i32) {
    %c0_i32 = arith.constant 0 : i32
    %c0_i32_0 = arith.constant 0 : i32
    %c0_i32_1 = arith.constant 0 : i32
    return %c0_i32, %c0_i32_0 : i32, i32
  }
  func.func @transform_9(%arg0: i32) -> (i32, i32) {
    %c0_i32 = arith.constant 0 : i32
    %c0_i32_0 = arith.constant 0 : i32
    return %arg0, %c0_i32 : i32, i32
  }
}

</mosaic_0001>

<bundles_post_ra>
// kernel: simple_model_forward.1
= control target key start
LH: loop header
LB: loop body
LE: loop exit
PB: predicated region body
PF: predicated region fallthrough
CT: control target
= control target key end

     0   :  { %14 = vsyncpa [#allocation3], 0  ;;  %s1001_s0 = inlined_call_operand.hbm [shape: bf16[16,128], index: 0, kind: input, shape index: {}]   ;;  %s1002_s1 = inlined_call_operand.hbm [shape: bf16[16,128], index: 1, kind: input, shape index: {}]   ;;  %s1003_s2 = inlined_call_operand.hbm [shape: s32[16,1], index: 2, kind: input, shape index: {}]   ;;  %s1004_s3 = inlined_call_operand.hbm [shape: f32[1,128], index: 3, kind: input, shape index: {}]   ;;  %s1005_s4 = inlined_call_operand.hbm [shape: f32[1,128], index: 4, kind: input, shape index: {}]   ;;  %s1006_s5 = inlined_call_operand.hbm [shape: f32[1,128], index: 5, kind: input, shape index: {}]   ;;  %s1007_s6 = inlined_call_operand.hbm [shape: f32[1,128], index: 6, kind: input, shape index: {}]   ;;  %s1008_s7 = inlined_call_operand.hbm [shape: bf16[128,128], index: 7, kind: input, shape index: {}]   ;;  %s1009_s8 = inlined_call_operand.hbm [shape: f32[1,128], index: 8, kind: input, shape index: {}]   ;;  %s1010_s9 = inlined_call_operand.hbm [shape: f32[16,1], index: 9, kind: output, shape index: {}]  }
   0x1   :  { %15 = vsyncpa [#allocation6], 0 }
   0x2   :  { %16 = vsyncpa [#allocation9], 0 }
   0x3   :  { %17 = vsyncpa [#allocation12], 0 }
   0x4   :  { %18 = vsyncpa [#allocation15], 0 }
   0x5   :  { %19 = vsyncpa [#allocation4], 0  ;;  %s745_s30 = smov [#allocation5]   ;;  %s746_s11 = smov [#allocation8]  }
   0x6   :  { %s37_s10 = sshll.u32 %s745_s30, 4  ;;  %s62_s12 = sshll.u32 %s746_s11, 4  ;;  %s38_s10 = int_to_ptr.vmem [resolvable:$true] %s37_s10  ;;  %s812_s12 = int_to_ptr.vmem [resolvable:$true] %s62_s12 }
   0x7   :  { %s513_s15 = scalar_lea.hbm %s1002_s1, 128 }
   0x8   :  { %p514_p0 = scmp.ne.s32.totalorder %s1002_s1, %s513_s15  ;;  %p517_p1 = scmp.lt.u32.totalorder %s513_s15, %s1002_s1 }
   0xa   :  { %p519_p2 = pnand %p517_p1, %p514_p0 }
   0xc   :  { %522 = shalt.err (!%p519_p2)
}
   0xd   :  { %s523_s20 = scalar_lea.vmem %s38_s10, 128  ;;  %p528_p4 = scmp.lt.s32.totalorder %s38_s10, %s38_s10 }
   0xe   :  { %p524_p3 = scmp.ne.s32.totalorder %s38_s10, %s523_s20  ;;  %p529_p5 = scmp.lt.s32.totalorder %s523_s20, %s523_s20 }
  0x10   :  { %p530_p6 = por %p529_p5, %p528_p4 }
  0x12   :  { %p531_p7 = pnand %p530_p6, %p524_p3 }
  0x14   :  { %534 = shalt.err (!%p531_p7)
}
  0x15   :  { %s747_s21 = smov 64   ;;  %s748_s22 = smov 4  }
  0x16   :  { %43 = dma.hbm_to_vmem [thread:$0]  %s1002_s1, 128, %s38_s10, [#allocation6], %s747_s21, %s747_s21, %s748_s22  }
  0x17   :  { %s535_s27 = scalar_lea.hbm %s1004_s3, 16 }
  0x18   :  { %p536_p8 = scmp.ne.s32.totalorder %s1004_s3, %s535_s27  ;;  %p539_p9 = scmp.lt.u32.totalorder %s535_s27, %s1004_s3 }
  0x1a   :  { %p541_p10 = pnand %p539_p9, %p536_p8 }
  0x1c   :  { %544 = shalt.err (!%p541_p10)
}
  0x1d   :  { %s545_s13 = scalar_lea.vmem %s812_s12, 16  ;;  %s549_s1 = scalar_lea.vmem %s812_s12, 32 }
  0x1e   :  { %p546_p11 = scmp.ne.s32.totalorder %s812_s12, %s545_s13  ;;  %p550_p12 = scmp.lt.s32.totalorder %s812_s12, %s812_s12 }
  0x1f   :  { %p551_p13 = scmp.lt.s32.totalorder %s549_s1, %s545_s13 }
  0x21   :  { %p552_p0 = por %p551_p13, %p550_p12 }
  0x23   :  { %p553_p1 = pnand %p552_p0, %p546_p11 }
  0x25   :  { %556 = shalt.err (!%p553_p1)
}
  0x26   :  { %65 = dma.hbm_to_vmem [thread:$0]  %s1004_s3, 16, %s812_s12, [#allocation9]  }
  0x27   :  { %s749_s15 = smov [#allocation11]   ;;  %s750_s17 = smov [#allocation14]  }
  0x28   :  { %s82_s16 = sshll.u32 %s749_s15, 4  ;;  %s101_s18 = sshll.u32 %s750_s17, 4  ;;  %s83_s16 = int_to_ptr.vmem [resolvable:$true] %s82_s16  ;;  %s847_s18 = int_to_ptr.vmem [resolvable:$true] %s101_s18 }
  0x29   :  { %s557_s23 = scalar_lea.hbm %s1006_s5, 16 }
  0x2a   :  { %p558_p2 = scmp.ne.s32.totalorder %s1006_s5, %s557_s23  ;;  %p561_p3 = scmp.lt.u32.totalorder %s557_s23, %s1006_s5 }
  0x2c   :  { %p563_p4 = pnand %p561_p3, %p558_p2 }
  0x2e   :  { %566 = shalt.err (!%p563_p4)
}
  0x2f   :  { %s567_s3 = scalar_lea.vmem %s83_s16, 16  ;;  %s571_s12 = scalar_lea.vmem %s83_s16, 32 }
  0x30   :  { %p568_p5 = scmp.ne.s32.totalorder %s83_s16, %s567_s3  ;;  %p572_p6 = scmp.lt.s32.totalorder %s83_s16, %s83_s16 }
  0x31   :  { %p573_p7 = scmp.lt.s32.totalorder %s571_s12, %s567_s3 }
  0x33   :  { %p574_p8 = por %p573_p7, %p572_p6 }
  0x35   :  { %p575_p9 = pnand %p574_p8, %p568_p5 }
  0x37   :  { %578 = shalt.err (!%p575_p9)
}
  0x38   :  { %85 = dma.hbm_to_vmem [thread:$0]  %s1006_s5, 16, %s83_s16, [#allocation12]  }
  0x39   :  { %s579_s13 = scalar_lea.hbm %s1008_s7, 1024 }
  0x3a   :  { %p580_p10 = scmp.ne.s32.totalorder %s1008_s7, %s579_s13  ;;  %p583_p11 = scmp.lt.u32.totalorder %s579_s13, %s1008_s7 }
  0x3c   :  { %p585_p12 = pnand %p583_p11, %p580_p10 }
  0x3e   :  { %588 = shalt.err (!%p585_p12)
}
  0x3f   :  { %s589_s17 = scalar_lea.vmem %s847_s18, 1024  ;;  %p594_p0 = scmp.lt.s32.totalorder %s847_s18, %s847_s18 }
  0x40   :  { %p590_p13 = scmp.ne.s32.totalorder %s847_s18, %s589_s17  ;;  %p595_p1 = scmp.lt.s32.totalorder %s589_s17, %s589_s17 }
  0x42   :  { %p596_p2 = por %p595_p1, %p594_p0 }
  0x44   :  { %p597_p3 = pnand %p596_p2, %p590_p13 }
  0x46   :  { %600 = shalt.err (!%p597_p3)
}
  0x47   :  { %107 = dma.hbm_to_vmem [thread:$0]  %s1008_s7, 1024, %s847_s18, [#allocation15], %s747_s21, %s747_s21, %s748_s22  }
  0x48   :  { %s751_s19 = smov [#allocation2]   ;;  %s752_s23 = smov [#allocation7]  }
  0x49   :  { %s25_s20 = sshll.u32 %s751_s19, 4  ;;  %s49_s24 = sshll.u32 %s752_s23, 4  ;;  %s26_s20 = int_to_ptr.vmem [resolvable:$true] %s25_s20  ;;  %s881_s24 = int_to_ptr.vmem [resolvable:$true] %s49_s24 }
  0x4a   :  { %s601_s27 = scalar_lea.hbm %s1001_s0, 128 }
  0x4b   :  { %p602_p4 = scmp.ne.s32.totalorder %s1001_s0, %s601_s27  ;;  %p605_p5 = scmp.lt.u32.totalorder %s601_s27, %s1001_s0 }
  0x4d   :  { %p607_p6 = pnand %p605_p5, %p602_p4 }
  0x4f   :  { %610 = shalt.err (!%p607_p6)
}
  0x50   :  { %s611_s7 = scalar_lea.vmem %s26_s20, 128  ;;  %p616_p8 = scmp.lt.s32.totalorder %s26_s20, %s26_s20 }
  0x51   :  { %p612_p7 = scmp.ne.s32.totalorder %s26_s20, %s611_s7  ;;  %p617_p9 = scmp.lt.s32.totalorder %s611_s7, %s611_s7 }
  0x53   :  { %p618_p10 = por %p617_p9, %p616_p8 }
  0x55   :  { %p619_p11 = pnand %p618_p10, %p612_p7 }
  0x57   :  { %622 = shalt.err (!%p619_p11)
}
  0x58   :  { %31 = dma.hbm_to_vmem [thread:$0]  %s1001_s0, 128, %s26_s20, [#allocation3], %s747_s21, %s747_s21, %s748_s22  }
  0x59   :  { %s623_s1 = scalar_lea.hbm %s1003_s2, 256 }
  0x5a   :  { %p624_p12 = scmp.ne.s32.totalorder %s1003_s2, %s623_s1  ;;  %p627_p13 = scmp.lt.u32.totalorder %s623_s1, %s1003_s2 }
  0x5c   :  { %p629_p0 = pnand %p627_p13, %p624_p12 }
  0x5e   :  { %632 = shalt.err (!%p629_p0)
}
  0x5f   :  { %s633_s5 = scalar_lea.vmem %s881_s24, 256  ;;  %p638_p2 = scmp.lt.s32.totalorder %s881_s24, %s881_s24 }
  0x60   :  { %p634_p1 = scmp.ne.s32.totalorder %s881_s24, %s633_s5  ;;  %p639_p3 = scmp.lt.s32.totalorder %s633_s5, %s633_s5 }
  0x62   :  { %p640_p4 = por %p639_p3, %p638_p2 }
  0x64   :  { %p641_p5 = pnand %p640_p4, %p634_p1 }
  0x66   :  { %644 = shalt.err (!%p641_p5)
}
  0x67   :  { %s753_s0 = smov 128   ;;  %s754_s21 = smov 8  }
  0x68   :  { %55 = dma.hbm_to_vmem [thread:$0]  %s1003_s2, 256, %s881_s24, [#allocation6], %s753_s0, %s753_s0, %s754_s21  }
  0x69   :  { %s755_s19 = smov [#allocation10]   ;;  %s756_s23 = smov [#allocation13]  }
  0x6a   :  { %s72_s20 = sshll.u32 %s755_s19, 4  ;;  %s92_s25 = sshll.u32 %s756_s23, 4  ;;  %s73_s20 = int_to_ptr.vmem [resolvable:$true] %s72_s20  ;;  %s93_s25 = int_to_ptr.vmem [resolvable:$true] %s92_s25 }
  0x6b   :  { %s645_s3 = scalar_lea.hbm %s1005_s4, 16 }
  0x6c   :  { %p646_p6 = scmp.ne.s32.totalorder %s1005_s4, %s645_s3  ;;  %p649_p7 = scmp.lt.u32.totalorder %s645_s3, %s1005_s4 }
  0x6e   :  { %p651_p8 = pnand %p649_p7, %p646_p6 }
  0x70   :  { %654 = shalt.err (!%p651_p8)
}
  0x71   :  { %s655_s2 = scalar_lea.vmem %s73_s20, 16  ;;  %s659_s24 = scalar_lea.vmem %s73_s20, 32 }
  0x72   :  { %p656_p9 = scmp.ne.s32.totalorder %s73_s20, %s655_s2  ;;  %p660_p10 = scmp.lt.s32.totalorder %s73_s20, %s73_s20 }
  0x73   :  { %p661_p11 = scmp.lt.s32.totalorder %s659_s24, %s655_s2 }
  0x75   :  { %p662_p12 = por %p661_p11, %p660_p10 }
  0x77   :  { %p663_p13 = pnand %p662_p12, %p656_p9 }
  0x79   :  { %666 = shalt.err (!%p663_p13)
}
  0x7a   :  { %75 = dma.hbm_to_vmem [thread:$0]  %s1005_s4, 16, %s73_s20, [#allocation9]  }
  0x7b   :  { %s667_s1 = scalar_lea.hbm %s1007_s6, 16 }
  0x7c   :  { %p668_p0 = scmp.ne.s32.totalorder %s1007_s6, %s667_s1  ;;  %p671_p1 = scmp.lt.u32.totalorder %s667_s1, %s1007_s6 }
  0x7e   :  { %p673_p2 = pnand %p671_p1, %p668_p0 }
  0x80   :  { %676 = shalt.err (!%p673_p2)
}
  0x81   :  { %s677_s5 = scalar_lea.vmem %s93_s25, 16  ;;  %s681_s22 = scalar_lea.vmem %s93_s25, 32 }
  0x82   :  { %p678_p3 = scmp.ne.s32.totalorder %s93_s25, %s677_s5  ;;  %p682_p4 = scmp.lt.s32.totalorder %s93_s25, %s93_s25 }
  0x83   :  { %p683_p5 = scmp.lt.s32.totalorder %s681_s22, %s677_s5 }
  0x85   :  { %p684_p6 = por %p683_p5, %p682_p4 }
  0x87   :  { %p685_p7 = pnand %p684_p6, %p678_p3 }
  0x89   :  { %688 = shalt.err (!%p685_p7)
}
  0x8a   :  { %95 = dma.hbm_to_vmem [thread:$0]  %s1007_s6, 16, %s93_s25, [#allocation12]  }
  0x8b   :  { %s757_s19 = smov [#allocation16]   ;;  %s689_s27 = scalar_lea.hbm %s1009_s8, 16 }
  0x8c   :  { %s114_s20 = sshll.u32 %s757_s19, 4  ;;  %p690_p8 = scmp.ne.s32.totalorder %s1009_s8, %s689_s27  ;;  %s115_s20 = int_to_ptr.vmem [resolvable:$true] %s114_s20 }
  0x8d   :  { %p693_p9 = scmp.lt.u32.totalorder %s689_s27, %s1009_s8 }
  0x8f   :  { %p695_p10 = pnand %p693_p9, %p690_p8 }
  0x91   :  { %698 = shalt.err (!%p695_p10)
}
  0x92   :  { %s699_s7 = scalar_lea.vmem %s115_s20, 16  ;;  %s703_s6 = scalar_lea.vmem %s115_s20, 32 }
  0x93   :  { %p700_p11 = scmp.ne.s32.totalorder %s115_s20, %s699_s7  ;;  %p704_p12 = scmp.lt.s32.totalorder %s115_s20, %s115_s20 }
  0x94   :  { %p705_p13 = scmp.lt.s32.totalorder %s703_s6, %s699_s7 }
  0x96   :  { %p706_p0 = por %p705_p13, %p704_p12 }
  0x98   :  { %p707_p1 = pnand %p706_p0, %p700_p11 }
  0x9a   :  { %710 = shalt.err (!%p707_p1)
}
  0x9b   :  { %117 = dma.hbm_to_vmem [thread:$0]  %s1009_s8, 16, %s115_s20, [#allocation15]  }
  0x9c   :  { %733 = dma.done.wait [#allocation3], 128  }
  0x9d   :  { %734 = vsyncadd [#allocation3], 4294967168 }
  0x9e   :  { %735 = dma.done.wait [#allocation6], 384  }
  0x9f   :  { %736 = vsyncadd [#allocation6], 4294966912 }
  0xa0   :  { %737 = dma.done.wait [#allocation9], 32  }
  0xa1   :  { %738 = vsyncadd [#allocation9], 4294967264 }
  0xa2   :  { %739 = dma.done.wait [#allocation12], 32  }
  0xa3   :  { %740 = vsyncadd [#allocation12], 4294967264 }
  0xa4   :  { %741 = dma.done.wait [#allocation15], 1040  }
  0xa5   :  { %742 = vsyncadd [#allocation15], 4294966256  ;;  %v434_v0 = vld [vmem:[#allocation2] sm:$0xff]   ;;  %v438_v1 = vld [vmem:[#allocation5] sm:$0xff]   ;;  %v146_v6 = vlaneseq  ;;  %v758_v29 = vmov 0.0   ;;  %vm759_vm1 = vmmov 0  }
  0xa6   :  { %v435_v2 = vunpack.c.l.bf16 %v434_v0  ;;  %v439_v3 = vunpack.c.l.bf16 %v438_v1  ;;  %v436_v4 = vunpack.c.h.bf16 %v434_v0  ;;  %v440_v5 = vunpack.c.h.bf16 %v438_v1  ;;  %v489_v28 = vld [vmem:[#allocation14] sm:$0xff]   ;;  %450 = vmatprep.subr.bf16.mxu0 %v758_v29  ;;  %v490_v30 = vld [vmem:[#allocation14 + $0x8] sm:$0xff]   ;;  %v491_v31 = vld [vmem:[#allocation14 + $0x10] sm:$0xff]   ;;  %466 = vmatprep.mubr.msk.bf16.mxu0 %vm759_vm1, %v758_v29  ;;  %s761_s8 = smov [#allocation17]  }
  0xa7   :  { %v954_v9 = vand.u32 127, %v146_v6  ;;  %451 = vmatpush3.bf16.msra.mxu0 %v489_v28  ;;  %v492_v32 = vld [vmem:[#allocation14 + $0x18] sm:$0xff]   ;;  %v493_v33 = vld [vmem:[#allocation14 + $0x20] sm:$0xff]   ;;  %v494_v34 = vld [vmem:[#allocation14 + $0x28] sm:$0xff]   ;;  %vm396_vm4 = vcmask 7168   ;;  %s404_s24 = sshll.u32 %s761_s8, 4  ;;  %s405_s24 = int_to_ptr.vmem [resolvable:$true] %s404_s24 }
  0xa8   :  { %155 = vadd.xlane.f32.xlu0 %v435_v2  ;;  %201 = vadd.xlane.f32.xlu1 %v439_v3  ;;  %v495_v35 = vld [vmem:[#allocation14 + $0x30] sm:$0xff]   ;;  %v496_v36 = vld [vmem:[#allocation14 + $0x38] sm:$0xff]   ;;  %s711_s18 = scalar_lea.vmem %s405_s24, 256  ;;  %p716_p3 = scmp.lt.s32.totalorder %s405_s24, %s405_s24 }
  0xa9   :  { %vm148_vm0 = vcmp.lt.s32.totalorder %v954_v9, 32  ;;  %452 = vmatprep.subr.bf16.mxu0 %v758_v29  ;;  %v422_v54 = vld [vmem:[#allocation11] ss:$0 sm:$0xff]  ;;  %v420_v55 = vld [vmem:[#allocation8] ss:$0 sm:$0xff]  ;;  %p712_p2 = scmp.ne.s32.totalorder %s405_s24, %s711_s18  ;;  %p717_p4 = scmp.lt.s32.totalorder %s711_s18, %s711_s18 }
  0xaa   :  { %v423_v58 = vld [vmem:[#allocation13] ss:$0 sm:$0xff]  ;;  %v421_v63 = vld [vmem:[#allocation10] ss:$0 sm:$0xff] }
  0xab   :  { %453 = vmatpush3.bf16.msra.mxu0 %v490_v30  ;;  %p718_p5 = por %p717_p4, %p716_p3 }
  0xac   :  { %157 = vadd.xlane.f32.xlu0 %v436_v4  ;;  %203 = vadd.xlane.f32.xlu1 %v440_v5 }
  0xad   :  { %454 = vmatprep.subr.bf16.mxu0 %v758_v29  ;;  %p719_p6 = pnand %p718_p5, %p712_p2 }
  0xaf   :  { %455 = vmatpush3.bf16.msra.mxu0 %v491_v31 }
  0xb0   :  { %456 = vmatprep.subr.bf16.mxu0 %v758_v29 }
  0xb3   :  { %457 = vmatpush3.bf16.msra.mxu0 %v492_v32 }
  0xb4   :  { %458 = vmatprep.subr.bf16.mxu0 %v758_v29 }
  0xb7   :  { %459 = vmatpush3.bf16.msra.mxu0 %v493_v33 }
  0xb8   :  { %460 = vmatprep.subr.bf16.mxu0 %v758_v29 }
  0xbb   :  { %461 = vmatpush3.bf16.msra.mxu0 %v494_v34 }
  0xbc   :  { %462 = vmatprep.subr.bf16.mxu0 %v758_v29 }
  0xbf   :  { %463 = vmatpush3.bf16.msra.mxu0 %v495_v35 }
  0xc0   :  { %464 = vmatprep.subr.bf16.mxu0 %v758_v29 }
  0xc3   :  { %465 = vmatpush3.bf16.msra.mxu0 %v496_v36 }
 0x135   :  { %v156_v7 = vpop.xlane.xlu0 %155  ;;  %v202_v8 = vpop.xlane.xlu1 %201 }
 0x136   :  { %v159_v10 = vmul.f32 0.03125, %v156_v7  ;;  %v205_v11 = vmul.f32 0.03125, %v202_v8  ;;  %v760_v8 = vmov 0  }
 0x137   :  { %488 = vset.pattern.permute.xlu1 %v760_v8  ;;  %487 = vset.pattern.permute.xlu0 %v760_v8 }
 0x138   :  { %v956_v12 = vsub.f32 %v435_v2, %v159_v10  ;;  %v958_v13 = vsub.f32 %v439_v3, %v205_v11  ;;  %v424_v10 = vld [vmem:[#allocation16] ss:$0 sm:$0xff] }
 0x139   :  { %v158_v14 = vpop.xlane.xlu0 %157  ;;  %v204_v15 = vpop.xlane.xlu1 %203 }
 0x13a   :  { %v160_v16 = vmul.f32 0.03125, %v158_v14  ;;  %v206_v17 = vmul.f32 0.03125, %v204_v15  ;;  %v163_v18 = vmul.f32 %v956_v12, %v956_v12  ;;  %v209_v19 = vmul.f32 %v958_v13, %v958_v13 }
 0x13c   :  { %v162_v20 = vsub.f32 %v436_v4, %v160_v16  ;;  %v965_v21 = vsub.f32 %v440_v5, %v206_v17  ;;  %v165_v22 = vsel %vm148_vm0, %v163_v18, 0.0  ;;  %v211_v23 = vsel %vm148_vm0, %v209_v19, 0.0  ;;  %v379_v19 = vld [vmem:[#allocation7 + $0x8] sm:$0xff] }
 0x13d   :  { %167 = vadd.xlane.f32.xlu0 %v165_v22 }
 0x13e   :  { %v164_v24 = vmul.f32 %v162_v20, %v162_v20  ;;  %v210_v25 = vmul.f32 %v965_v21, %v965_v21 }
 0x140   :  { %v166_v26 = vsel %vm148_vm0, %v164_v24, 0.0  ;;  %v212_v27 = vsel %vm148_vm0, %v210_v25, 0.0 }
 0x141   :  { %213 = vadd.xlane.f32.xlu0 %v211_v23  ;;  %169 = vadd.xlane.f32.xlu1 %v166_v26 }
 0x145   :  { %215 = vadd.xlane.f32.xlu1 %v212_v27 }
 0x1ca   :  { %v168_v37 = vpop.xlane.xlu0 %167 }
 0x1cb   :  { %v171_v38 = vmul.f32 0.03125, %v168_v37 }
 0x1cd   :  { %v173_v39 = vadd.f32 1e-12, %v171_v38 }
 0x1ce   :  { %v170_v40 = vpop.xlane.xlu1 %169  ;;  %v214_v41 = vpop.xlane.xlu0 %213 }
 0x1cf   :  { %v172_v42 = vmul.f32 0.03125, %v170_v40  ;;  %v217_v43 = vmul.f32 0.03125, %v214_v41  ;;  %497 = vrsqrt.f32 %v173_v39 }
 0x1d1   :  { %v174_v44 = vadd.f32 1e-12, %v172_v42  ;;  %v219_v45 = vadd.f32 1e-12, %v217_v43 }
 0x1d2   :  { %v216_v46 = vpop.xlane.xlu1 %215 }
 0x1d3   :  { %499 = vrsqrt.f32 %v174_v44  ;;  %v218_v47 = vmul.f32 0.03125, %v216_v46 }
 0x1d4   :  { %501 = vrsqrt.f32 %v219_v45 }
 0x1d5   :  { %v220_v48 = vadd.f32 1e-12, %v218_v47 }
 0x1d7   :  { %503 = vrsqrt.f32 %v220_v48 }
 0x1d9   :  { %v498_v49 = vpop.eup %497 }
 0x1da   :  { %v177_v52 = vmul.f32 %v498_v49, %v956_v12 }
 0x1dc   :  { %v185_v60 = vmul.f32 %v420_v55, %v177_v52 }
 0x1dd   :  { %v500_v50 = vpop.eup %499 }
 0x1de   :  { %v502_v51 = vpop.eup %501  ;;  %v178_v53 = vmul.f32 %v500_v50, %v162_v20  ;;  %v193_v2 = vadd.f32 %v421_v63, %v185_v60  ;;  %v378_v20 = vld [vmem:[#allocation7] sm:$0xff] }
 0x1df   :  { %v223_v56 = vmul.f32 %v502_v51, %v958_v13 }
 0x1e0   :  { %v186_v61 = vmul.f32 %v420_v55, %v178_v53 }
 0x1e1   :  { %v504_v57 = vpop.eup %503  ;;  %v231_v59 = vmul.f32 %v422_v54, %v223_v56 }
 0x1e2   :  { %v224_v62 = vmul.f32 %v504_v57, %v965_v21  ;;  %v194_v3 = vadd.f32 %v421_v63, %v186_v61 }
 0x1e3   :  { %v239_v1 = vadd.f32 %v423_v58, %v231_v59 }
 0x1e4   :  { %v232_v0 = vmul.f32 %v422_v54, %v224_v62 }
 0x1e5   :  { %v241_v5 = vadd.f32 %v239_v1, %v193_v2 }
 0x1e6   :  { %v240_v4 = vadd.f32 %v423_v58, %v232_v0 }
 0x1e8   :  { %v242_v6 = vadd.f32 %v240_v4, %v194_v3 }
 0x1ea   :  { %v243_v7 = vpack.c.bf16 %v242_v6, %v241_v5 }
 0x1ec   :  { %467 = vmatmul.mubr.bf16.vlgmr.msra.gmra.mrb[0].mxu0 %v243_v7 }
 0x2bf   :  { %v349_v11 = vpop.f32.mrb[0].mxu0 }
 0x2c0   :  { %v350_v12 = vadd.f32 %v424_v10, %v349_v11  ;;  %v468_v13 = vpop.f32.mrb[1].mxu0 }
 0x2c1   :  { %v352_v14 = vpop.f32.mrb[2].mxu0 }
 0x2c2   :  { %v353_v15 = vadd.f32 %v424_v10, %v352_v14  ;;  %v469_v16 = vpop.f32.mrb[3].mxu0  ;;  %v356_v17 = vsel %vm148_vm0, %v350_v12, -1e+30 }
 0x2c3   :  { %358 = vmax.xlane.f32.xlu0 %v356_v17 }
 0x2c4   :  { %v357_v18 = vsel %vm148_vm0, %v353_v15, -1e+30 }
 0x2c5   :  { %360 = vmax.xlane.f32.xlu1 %v357_v18 }
 0x2d6   :  { %384 = vperm.xlu1 %488, %v379_v19  }
 0x2d9   :  { %381 = vperm.xlu0 %487, %v378_v20  }
 0x350   :  { %v359_v21 = vpop.xlane.xlu0 %358 }
 0x351   :  { %v362_v22 = vsub.f32 %v356_v17, %v359_v21 }
 0x352   :  { %v361_v23 = vpop.xlane.xlu1 %360 }
 0x353   :  { %v364_v24 = vmul.f32 1.442695, %v362_v22  ;;  %v363_v25 = vsub.f32 %v357_v18, %v361_v23 }
 0x355   :  { %505 = vpow2.f32 %v364_v24  ;;  %v366_v26 = vmul.f32 1.442695, %v363_v25 }
 0x356   :  { %v385_v30 = vpop.permute.xlu1 %384 }
 0x357   :  { %507 = vpow2.f32 %v366_v26  ;;  %vm387_vm3 = vcmp.eq.s32.totalorder %v954_v9, %v385_v30 }
 0x358   :  { %v382_v27 = vpop.permute.xlu0 %381  ;;  %v389_v32 = vsel %vm387_vm3, %v353_v15, 0.0 }
 0x359   :  { %vm386_vm2 = vcmp.eq.s32.totalorder %v954_v9, %v382_v27 }
 0x35a   :  { %v388_v31 = vsel %vm386_vm2, %v350_v12, 0.0 }
 0x35f   :  { %v506_v28 = vpop.eup %505 }
 0x360   :  { %368 = vadd.xlane.f32.xlu1 %v506_v28 }
 0x361   :  { %v508_v29 = vpop.eup %507 }
 0x362   :  { %370 = vadd.xlane.f32.xlu0 %v508_v29 }
 0x364   :  { %390 = vadd.xlane.f32.xlu1 %v388_v31 }
 0x368   :  { %392 = vadd.xlane.f32.xlu1 %v389_v32 }
 0x3ed   :  { %v369_v33 = vpop.xlane.xlu1 %368 }
 0x3ee   :  { %509 = vlog2.f32 %v369_v33 }
 0x3ef   :  { %v371_v34 = vpop.xlane.xlu0 %370 }
 0x3f0   :  { %511 = vlog2.f32 %v371_v34 }
 0x3f1   :  { %v391_v36 = vpop.xlane.xlu1 %390 }
 0x3f5   :  { %v393_v43 = vpop.xlane.xlu1 %392 }
 0x3f8   :  { %v510_v35 = vpop.eup %509 }
 0x3f9   :  { %v373_v37 = vmul.f32 0.6931472, %v510_v35 }
 0x3fa   :  { %v512_v38 = vpop.eup %511 }
 0x3fb   :  { %v375_v39 = vmul.f32 0.6931472, %v512_v38  ;;  %v376_v40 = vadd.f32 %v373_v37, %v359_v21 }
 0x3fd   :  { %v394_v41 = vsub.f32 %v376_v40, %v391_v36  ;;  %v377_v42 = vadd.f32 %v375_v39, %v361_v23 }
 0x3ff   :  { %v395_v9 = vsub.f32 %v377_v42, %v393_v43  ;;  %397 = vst.msk [vmem:[#allocation17] sm:$0xff] %vm396_vm4, %v394_v41 }
 0x401   :  { %398 = vst.msk [vmem:[#allocation17 + $0x8] sm:$0xff] %vm396_vm4, %v395_v9 }
 0x402   :  { %722 = shalt.err (!%p719_p6)
}
 0x403   :  { %s723_s13 = scalar_lea.hbm %s1010_s9, 256 }
 0x404   :  { %p724_p7 = scmp.ne.s32.totalorder %s1010_s9, %s723_s13  ;;  %p727_p8 = scmp.lt.u32.totalorder %s723_s13, %s1010_s9 }
 0x406   :  { %p729_p9 = pnand %p727_p8, %p724_p7 }
 0x408   :  { %732 = shalt.err (!%p729_p9)
}
 0x409   :  { %410 = dma.vmem_to_hbm [thread:$0]  %s405_s24, 256, %s1010_s9, [#allocation4], %s753_s0, %s753_s0, %s754_s21  }
 0x40a   :  { %743 = dma.done.wait [#allocation4], 256  }
 0x40b   :  { %744 = vsyncadd [#allocation4], 4294967040 }
 0x40c   :  { %414 = vsyncpa [#allocation3], 1 }
 0x40d   :  { %415 = vsyncpa [#allocation6], 1 }
 0x40e   :  { %416 = vsyncpa [#allocation9], 1 }
 0x40f   :  { %417 = vsyncpa [#allocation12], 1 }
 0x410   :  { %418 = vsyncpa [#allocation15], 1 }
 0x411   :  { %419 = vsyncpa [#allocation4], 1 }

</bundles_post_ra>
